<compile_context>
chip_gen: v7x
topology: tpu7x:2x2x1
jax: 0.10.0
libtpu: 0.0.40
codegen_flags: <defaults>
</compile_context>

<pallas_src>
import jax
import jax.numpy as jnp
from jax.experimental import pallas as pl
from jax.experimental.pallas import tpu as pltpu


def _copy_kernel(x_ref, o_ref):
    # Identity tile copy — the only compute implied by the (empty) forward.
    o_ref[...] = x_ref[...]


def _round_up(v: int, m: int) -> int:
    return ((v + m - 1) // m) * m


def _round_down(v: int, m: int) -> int:
    return (v // m) * m


def _is_v7x_class() -> bool:
    # Best-effort chip detection; v7x has 2 TensorCores per chip and a
    # smaller (64 MiB) but faster-fed VMEM.
    try:
        kind = jax.devices()[0].device_kind.lower()
        return "7" in kind
    except Exception:
        return False


def _tile_byte_target() -> int:
    # ~4 MiB tiles amortize the ~0.35 us per-grid-step overhead on v5e/v6e.
    # v7x HBM (~3.2 TB/s/TC) drains each tile ~2.3x faster, so go bigger
    # while keeping 4x tile (double-buffered in + out) <= ~24 MiB.
    return (6 << 20) if _is_v7x_class() else (4 << 20)


def identity_pallas(x: jax.Array, *, donate: bool = False,
                    min_bytes: int = 1 << 20, tile_bytes=None) -> jax.Array:
    """Row-tiled identity copy over a 2-D [nodes, features] matrix.

    donate=True aliases the output onto the (donated) input buffer; the
    caller must not read `x` afterwards.
    """
    assert x.ndim == 2, "identity_pallas expects a 2-D [nodes, features] array"
    n, d = x.shape
    itemsize = jnp.dtype(x.dtype).itemsize
    total_bytes = n * d * itemsize

    # Tiny inputs: launch overhead dwarfs the copy — skip the kernel.
    if n == 0 or d == 0 or total_bytes < min_bytes:
        return x

    target = int(tile_bytes) if tile_bytes is not None else _tile_byte_target()
    target = max(target, 8 * 128 * itemsize)
    row_bytes = d * itemsize

    row_sem = pltpu.CORE_PARALLEL if _is_v7x_class() else pltpu.PARALLEL

    if 8 * row_bytes <= target:
        # Row-tiled, full-feature-width blocks. Last block dim == full array
        # dim, so it is exempt from the 128-divisibility rule; Pallas masks
        # the trailing partial row block.
        tm = max(8, _round_down(target // row_bytes, 8))
        tm = min(tm, _round_up(n, 8))
        block = (tm, d)
        grid = (pl.cdiv(n, tm),)
        in_spec = pl.BlockSpec(block, lambda i: (i, 0))
        out_spec = pl.BlockSpec(block, lambda i: (i, 0))
        semantics = (row_sem,)
        tile_resident = tm * d * itemsize
    else:
        # Very wide feature dim: tile the lane axis too (TN multiple of 128)
        # instead of clamping TM to 8 rows and blowing past scoped VMEM.
        tn = max(128, _round_down(target // (8 * itemsize), 128))
        tn = min(tn, max(128, _round_down(d, 128)))
        tm = max(8, _round_down(target // (tn * itemsize), 8))
        tm = min(tm, _round_up(n, 8))
        block = (tm, tn)
        grid = (pl.cdiv(n, tm), pl.cdiv(d, tn))
        in_spec = pl.BlockSpec(block, lambda i, j: (i, j))
        out_spec = pl.BlockSpec(block, lambda i, j: (i, j))
        semantics = (row_sem, pltpu.PARALLEL)
        tile_resident = tm * tn * itemsize

    # Double-buffered input + output tiles (default depth 2) => 4x tile.
    vmem_need = 4 * tile_resident
    vmem_limit = int(min(max(vmem_need + (8 << 20), 16 << 20), 32 << 20))
    vmem_limit = max(vmem_limit, vmem_need + (2 << 20))

    call = pl.pallas_call(
        _copy_kernel,
        out_shape=jax.ShapeDtypeStruct((n, d), x.dtype),
        grid=grid,
        in_specs=[in_spec],
        out_specs=out_spec,
        input_output_aliases=({0: 0} if donate else {}),
        compiler_params=pltpu.CompilerParams(
            dimension_semantics=semantics,
            vmem_limit_bytes=vmem_limit,
        ),
    )

    if donate:
        # Donation makes the alias real: the output writes back into the
        # input's HBM buffer (no fresh allocation, no defensive copy).
        return jax.jit(call, donate_argnums=0)(x)
    return call(x)


class GVPGNN:
    """JAX/Pallas mirror of the (empty) PyTorch GVPGNN module."""

    def __init__(self, d_in: int, d_out: int):
        # Reference __init__ creates no parameters.
        self.d_in = d_in
        self.d_out = d_out

    def forward(self, data):
        # Reference forward body is `pass` -> returns None.
        return None

    __call__ = forward


if __name__ == "__main__":
    key = jax.random.PRNGKey(0)
    k1, k2, k3, k4 = jax.random.split(key, 4)

    # Module-consistent tiny "graph data": node features [num_nodes, d_in].
    num_nodes, d_in, d_out = 8, 32, 32
    data = jax.random.normal(k1, (num_nodes, d_in), dtype=jnp.float32)

    # Semantics-exact forward (returns None, as in the PyTorch module).
    model = GVPGNN(d_in, d_out)
    assert model(data) is None

    # Tiny input short-circuits the kernel entirely.
    tiny_out = identity_pallas(data)
    assert tiny_out is data

    # Row-tiled path: non-128-multiple feature dim, partial trailing row block.
    x1 = jax.random.normal(k2, (2048, 200), dtype=jnp.float32)
    y1 = identity_pallas(x1, min_bytes=0, tile_bytes=512 * 1024)
    jax.block_until_ready(y1)
    assert y1.shape == x1.shape
    assert bool(jnp.all(y1 == x1))

    # Wide-feature path: 2-D (row x lane) grid with 128-multiple lane tiles.
    x2 = jax.random.normal(k3, (64, 4096), dtype=jnp.float32)
    y2 = identity_pallas(x2, min_bytes=0, tile_bytes=64 * 1024)
    jax.block_until_ready(y2)
    assert y2.shape == x2.shape
    assert bool(jnp.all(y2 == x2))

    # Donated/aliased path: output reuses the input's HBM buffer.
    x3 = jax.random.normal(k4, (1024, 256), dtype=jnp.float32)
    x3_ref = x3 + 0.0  # independent copy for validation (x3 gets donated)
    y3 = identity_pallas(x3, donate=True, min_bytes=0)
    jax.block_until_ready(y3)
    assert y3.shape == x3_ref.shape
    assert bool(jnp.all(y3 == x3_ref))
    # NOTE: x3 is donated above and must not be read past this point.

    print("KERNEL_OK")
</pallas_src>

<mosaic_0001>
module attributes {stable_mosaic.version = 11 : i64} {
  func.func @_copy_kernel(%arg0: i32, %arg1: memref<648x200xf32, #tpu.memory_space<vmem>>, %arg2: memref<648x200xf32, #tpu.memory_space<vmem>>) attributes {dimension_semantics = [#tpu.dimension_semantics<parallel>], iteration_bounds = array<i64: 4>, scalar_prefetch = 0 : i64, scratch_operands = 0 : i64, tpu.core_type = #tpu.core_type<tc>, window_params = [{transform_indices = @transform_0, window_bounds = array<i64: 648, 200>}, {transform_indices = @transform_1, window_bounds = array<i64: 648, 200>}]} {
    %c0 = arith.constant 0 : index
    %c0_0 = arith.constant 0 : index
    %0 = vector.load %arg1[%c0, %c0_0] : memref<648x200xf32, #tpu.memory_space<vmem>>, vector<648x200xf32>
    %c0_1 = arith.constant 0 : index
    %c0_2 = arith.constant 0 : index
    %1 = vector.load %arg2[%c0_1, %c0_2] : memref<648x200xf32, #tpu.memory_space<vmem>>, vector<648x200xf32>
    tpu.vector_store %arg2[%c0_1, %c0_2], %0 {strides = array<i32>} : memref<648x200xf32, #tpu.memory_space<vmem>>, vector<648x200xf32>,
    return
  }
  func.func @transform_0(%arg0: i32) -> (i32, i32) {
    %c0_i32 = arith.constant 0 : i32
    %c0_i32_0 = arith.constant 0 : i32
    return %arg0, %c0_i32 : i32, i32
  }
  func.func @transform_1(%arg0: i32) -> (i32, i32) {
    %c0_i32 = arith.constant 0 : i32
    %c0_i32_0 = arith.constant 0 : i32
    return %arg0, %c0_i32 : i32, i32
  }
}

</mosaic_0001>

<bundles_post_ra>
// kernel: tpu_custom_call.1
= control target key start
LH: loop header
LB: loop body
LE: loop exit
PB: predicated region body
PF: predicated region fallthrough
CT: control target
= control target key end

     0   :  { %s973_s6 = smov 0   ;;  %s975_s7 = smov 0   ;;  %s1626_s0 = inlined_call_operand.vmem [shape: f32[2048,200], index: 0, kind: input, shape index: {}]   ;;  %s1627_s1 = inlined_call_operand.vmem [shape: f32[2048,200], index: 1, kind: output, shape index: {}]  }
   0x1   :  { %s977_s8 = smov 0  }
   0x2 LB: > { %s984_s9 = sadd.s32 4294967295, %s929_s8   ;;  %s986_s10 = sadd.s32 1, %s929_s8   ;;  %s929_s8 = sphi %s977_s8, %s1636_s8   ;;  %s925_s7 = sphi %s975_s7, %s1635_s7   ;;  %s921_s6 = sphi %s973_s6, %s1634_s6  }
   0x3   : > { %s41_s11 = ssub.s32 %s929_s8, %s986_s10  ;;  %s44_s12 = sadd.s32 1, %s925_s7 }
   0x4   : > { %p42_p0 = scmp.eq.s32.totalorder %s41_s11, 0  ;;  %p54_p1 = scmp.ne.s32.totalorder %s925_s7, %s921_s6 }
   0x5   : > { %p55_p2 = scmp.eq.s32.totalorder %s984_s9, 3  ;;  %p759_p3 = scmp.ge.s32.totalorder %s929_s8, 1 }
   0x6   : > { %s993_s13 = scalar_select %p42_p0, %s925_s7, %s44_s12  }
   0x7   : > { %p995_p4 = por %p55_p2, %p54_p1  ;;  %p99_p5 = scmp.lt.s32.totalorder %s929_s8, 5 }
   0x9   : > { %p100_p6 = pnand %p759_p3, %p99_p5 }
   0xa   : > { %s121_s15 = sand.u32 (!%p100_p6), 1, %s921_s6   ;;  %s1000_s16 = smul.u32 (!%p100_p6), 81, %s984_s9  ;;  %vm310_vm0 = vcmask (!%p100_p6), 588800  }
   0xb   : > { %103 = sbr.rel (%p100_p6) target bundleno = 176 (0xb0), region = 24 }
   0xc   : > { %s786_s17 = smul.u32 (!%p100_p6), 1296, %s121_s15  ;;  %p130_p7 = scmp.lt.s32.totalorder (!%p100_p6), %s1000_s16, 255 }
   0xe   : > { %s1012_s23 = scalar_lea.vmem (!%p100_p6), [#allocation2], %s786_s17  }
  0x12   : > { %s131_s18 = scalar_select %p130_p7, %s1000_s16, 255 }
  0x13   : > { %s480_s24 = ssub.s32 (%p995_p4), 256, %s1000_s16  ;;  %s785_s25 = smul.u32 (%p995_p4), 1296, %s984_s9 }
  0x14   : > { %s779_s19 = sshll.u32 %s131_s18, 4  ;;  %p481_p8 = scmp.lt.s32.totalorder (%p995_p4), %s480_s24, 81 }
  0x15   : > { %s1007_s22 = scalar_lea.vmem %s1626_s0, %s779_s19  ;;  %s1423_s28 = scalar_lea.vmem (%p995_p4), %s1627_s1, %s785_s25  }
  0x16   : > { %v147_v0 = vld [vmem:[%s1007_s22] sm:$0xff]  ;;  %v148_v1 = vld [vmem:[%s1007_s22 + $0x8] sm:$0xff]  ;;  %v149_v2 = vld [vmem:[%s1007_s22 + $0x10] sm:$0xff] }
  0x17   : > { %309 = vst [vmem:[%s1012_s23] sm:$0xff] %v147_v0  ;;  %311 = vst.msk [vmem:[%s1012_s23 + $0x8] sm:$0xff] %vm310_vm0, %v148_v1  ;;  %v150_v3 = vld [vmem:[%s1007_s22 + $0x18] sm:$0xff]  ;;  %v151_v4 = vld [vmem:[%s1007_s22 + $0x20] sm:$0xff] }
  0x18   : > { %312 = vst [vmem:[%s1012_s23 + $0x10] sm:$0xff] %v149_v2  ;;  %v152_v5 = vld [vmem:[%s1007_s22 + $0x28] sm:$0xff]  ;;  %313 = vst.msk [vmem:[%s1012_s23 + $0x18] sm:$0xff] %vm310_vm0, %v150_v3  ;;  %v153_v6 = vld [vmem:[%s1007_s22 + $0x30] sm:$0xff] }
  0x19   : > { %314 = vst [vmem:[%s1012_s23 + $0x20] sm:$0xff] %v151_v4  ;;  %315 = vst.msk [vmem:[%s1012_s23 + $0x28] sm:$0xff] %vm310_vm0, %v152_v5  ;;  %v154_v7 = vld [vmem:[%s1007_s22 + $0x38] sm:$0xff]  ;;  %v155_v8 = vld [vmem:[%s1007_s22 + $0x40] sm:$0xff] }
  0x1a   : > { %316 = vst [vmem:[%s1012_s23 + $0x30] sm:$0xff] %v153_v6  ;;  %317 = vst.msk [vmem:[%s1012_s23 + $0x38] sm:$0xff] %vm310_vm0, %v154_v7  ;;  %v156_v9 = vld [vmem:[%s1007_s22 + $0x48] sm:$0xff]  ;;  %v157_v10 = vld [vmem:[%s1007_s22 + $0x50] sm:$0xff] }
  0x1b   : > { %318 = vst [vmem:[%s1012_s23 + $0x40] sm:$0xff] %v155_v8  ;;  %v158_v11 = vld [vmem:[%s1007_s22 + $0x58] sm:$0xff]  ;;  %319 = vst.msk [vmem:[%s1012_s23 + $0x48] sm:$0xff] %vm310_vm0, %v156_v9  ;;  %v159_v12 = vld [vmem:[%s1007_s22 + $0x60] sm:$0xff] }
  0x1c   : > { %320 = vst [vmem:[%s1012_s23 + $0x50] sm:$0xff] %v157_v10  ;;  %321 = vst.msk [vmem:[%s1012_s23 + $0x58] sm:$0xff] %vm310_vm0, %v158_v11  ;;  %v160_v13 = vld [vmem:[%s1007_s22 + $0x68] sm:$0xff]  ;;  %v161_v14 = vld [vmem:[%s1007_s22 + $0x70] sm:$0xff] }
  0x1d   : > { %322 = vst [vmem:[%s1012_s23 + $0x60] sm:$0xff] %v159_v12  ;;  %323 = vst.msk [vmem:[%s1012_s23 + $0x68] sm:$0xff] %vm310_vm0, %v160_v13  ;;  %v162_v15 = vld [vmem:[%s1007_s22 + $0x78] sm:$0xff]  ;;  %v163_v16 = vld [vmem:[%s1007_s22 + $0x80] sm:$0xff] }
  0x1e   : > { %324 = vst [vmem:[%s1012_s23 + $0x70] sm:$0xff] %v161_v14  ;;  %v164_v17 = vld [vmem:[%s1007_s22 + $0x88] sm:$0xff]  ;;  %325 = vst.msk [vmem:[%s1012_s23 + $0x78] sm:$0xff] %vm310_vm0, %v162_v15  ;;  %v165_v18 = vld [vmem:[%s1007_s22 + $0x90] sm:$0xff] }
  0x1f   : > { %326 = vst [vmem:[%s1012_s23 + $0x80] sm:$0xff] %v163_v16  ;;  %327 = vst.msk [vmem:[%s1012_s23 + $0x88] sm:$0xff] %vm310_vm0, %v164_v17  ;;  %v166_v19 = vld [vmem:[%s1007_s22 + $0x98] sm:$0xff]  ;;  %v167_v20 = vld [vmem:[%s1007_s22 + $0xa0] sm:$0xff] }
  0x20   : > { %328 = vst [vmem:[%s1012_s23 + $0x90] sm:$0xff] %v165_v18  ;;  %329 = vst.msk [vmem:[%s1012_s23 + $0x98] sm:$0xff] %vm310_vm0, %v166_v19  ;;  %v168_v21 = vld [vmem:[%s1007_s22 + $0xa8] sm:$0xff]  ;;  %v169_v22 = vld [vmem:[%s1007_s22 + $0xb0] sm:$0xff] }
  0x21   : > { %330 = vst [vmem:[%s1012_s23 + $0xa0] sm:$0xff] %v167_v20  ;;  %v170_v23 = vld [vmem:[%s1007_s22 + $0xb8] sm:$0xff]  ;;  %331 = vst.msk [vmem:[%s1012_s23 + $0xa8] sm:$0xff] %vm310_vm0, %v168_v21  ;;  %v171_v24 = vld [vmem:[%s1007_s22 + $0xc0] sm:$0xff] }
  0x22   : > { %332 = vst [vmem:[%s1012_s23 + $0xb0] sm:$0xff] %v169_v22  ;;  %333 = vst.msk [vmem:[%s1012_s23 + $0xb8] sm:$0xff] %vm310_vm0, %v170_v23  ;;  %v172_v25 = vld [vmem:[%s1007_s22 + $0xc8] sm:$0xff]  ;;  %v173_v26 = vld [vmem:[%s1007_s22 + $0xd0] sm:$0xff] }
  0x23   : > { %334 = vst [vmem:[%s1012_s23 + $0xc0] sm:$0xff] %v171_v24  ;;  %335 = vst.msk [vmem:[%s1012_s23 + $0xc8] sm:$0xff] %vm310_vm0, %v172_v25  ;;  %v174_v27 = vld [vmem:[%s1007_s22 + $0xd8] sm:$0xff]  ;;  %v175_v28 = vld [vmem:[%s1007_s22 + $0xe0] sm:$0xff] }
  0x24   : > { %336 = vst [vmem:[%s1012_s23 + $0xd0] sm:$0xff] %v173_v26  ;;  %v176_v29 = vld [vmem:[%s1007_s22 + $0xe8] sm:$0xff]  ;;  %337 = vst.msk [vmem:[%s1012_s23 + $0xd8] sm:$0xff] %vm310_vm0, %v174_v27  ;;  %v177_v30 = vld [vmem:[%s1007_s22 + $0xf0] sm:$0xff] }
  0x25   : > { %338 = vst [vmem:[%s1012_s23 + $0xe0] sm:$0xff] %v175_v28  ;;  %339 = vst.msk [vmem:[%s1012_s23 + $0xe8] sm:$0xff] %vm310_vm0, %v176_v29  ;;  %v178_v31 = vld [vmem:[%s1007_s22 + $0xf8] sm:$0xff]  ;;  %v179_v32 = vld [vmem:[%s1007_s22 + $0x100] sm:$0xff] }
  0x26   : > { %340 = vst [vmem:[%s1012_s23 + $0xf0] sm:$0xff] %v177_v30  ;;  %341 = vst.msk [vmem:[%s1012_s23 + $0xf8] sm:$0xff] %vm310_vm0, %v178_v31  ;;  %v180_v33 = vld [vmem:[%s1007_s22 + $0x108] sm:$0xff]  ;;  %v181_v34 = vld [vmem:[%s1007_s22 + $0x110] sm:$0xff] }
  0x27   : > { %342 = vst [vmem:[%s1012_s23 + $0x100] sm:$0xff] %v179_v32  ;;  %v182_v35 = vld [vmem:[%s1007_s22 + $0x118] sm:$0xff]  ;;  %343 = vst.msk [vmem:[%s1012_s23 + $0x108] sm:$0xff] %vm310_vm0, %v180_v33  ;;  %v183_v36 = vld [vmem:[%s1007_s22 + $0x120] sm:$0xff] }
  0x28   : > { %344 = vst [vmem:[%s1012_s23 + $0x110] sm:$0xff] %v181_v34  ;;  %345 = vst.msk [vmem:[%s1012_s23 + $0x118] sm:$0xff] %vm310_vm0, %v182_v35  ;;  %v184_v37 = vld [vmem:[%s1007_s22 + $0x128] sm:$0xff]  ;;  %v185_v38 = vld [vmem:[%s1007_s22 + $0x130] sm:$0xff] }
  0x29   : > { %346 = vst [vmem:[%s1012_s23 + $0x120] sm:$0xff] %v183_v36  ;;  %347 = vst.msk [vmem:[%s1012_s23 + $0x128] sm:$0xff] %vm310_vm0, %v184_v37  ;;  %v186_v39 = vld [vmem:[%s1007_s22 + $0x138] sm:$0xff]  ;;  %v187_v40 = vld [vmem:[%s1007_s22 + $0x140] sm:$0xff] }
  0x2a   : > { %348 = vst [vmem:[%s1012_s23 + $0x130] sm:$0xff] %v185_v38  ;;  %v188_v41 = vld [vmem:[%s1007_s22 + $0x148] sm:$0xff]  ;;  %349 = vst.msk [vmem:[%s1012_s23 + $0x138] sm:$0xff] %vm310_vm0, %v186_v39  ;;  %v189_v42 = vld [vmem:[%s1007_s22 + $0x150] sm:$0xff] }
  0x2b   : > { %350 = vst [vmem:[%s1012_s23 + $0x140] sm:$0xff] %v187_v40  ;;  %351 = vst.msk [vmem:[%s1012_s23 + $0x148] sm:$0xff] %vm310_vm0, %v188_v41  ;;  %v190_v43 = vld [vmem:[%s1007_s22 + $0x158] sm:$0xff]  ;;  %v191_v44 = vld [vmem:[%s1007_s22 + $0x160] sm:$0xff] }
  0x2c   : > { %352 = vst [vmem:[%s1012_s23 + $0x150] sm:$0xff] %v189_v42  ;;  %353 = vst.msk [vmem:[%s1012_s23 + $0x158] sm:$0xff] %vm310_vm0, %v190_v43  ;;  %v192_v45 = vld [vmem:[%s1007_s22 + $0x168] sm:$0xff]  ;;  %v193_v46 = vld [vmem:[%s1007_s22 + $0x170] sm:$0xff] }
  0x2d   : > { %354 = vst [vmem:[%s1012_s23 + $0x160] sm:$0xff] %v191_v44  ;;  %v194_v47 = vld [vmem:[%s1007_s22 + $0x178] sm:$0xff]  ;;  %355 = vst.msk [vmem:[%s1012_s23 + $0x168] sm:$0xff] %vm310_vm0, %v192_v45  ;;  %v195_v48 = vld [vmem:[%s1007_s22 + $0x180] sm:$0xff] }
  0x2e   : > { %356 = vst [vmem:[%s1012_s23 + $0x170] sm:$0xff] %v193_v46  ;;  %357 = vst.msk [vmem:[%s1012_s23 + $0x178] sm:$0xff] %vm310_vm0, %v194_v47  ;;  %v196_v49 = vld [vmem:[%s1007_s22 + $0x188] sm:$0xff]  ;;  %v197_v50 = vld [vmem:[%s1007_s22 + $0x190] sm:$0xff] }
  0x2f   : > { %358 = vst [vmem:[%s1012_s23 + $0x180] sm:$0xff] %v195_v48  ;;  %359 = vst.msk [vmem:[%s1012_s23 + $0x188] sm:$0xff] %vm310_vm0, %v196_v49  ;;  %v198_v51 = vld [vmem:[%s1007_s22 + $0x198] sm:$0xff]  ;;  %v199_v52 = vld [vmem:[%s1007_s22 + $0x1a0] sm:$0xff] }
  0x30   : > { %360 = vst [vmem:[%s1012_s23 + $0x190] sm:$0xff] %v197_v50  ;;  %v200_v53 = vld [vmem:[%s1007_s22 + $0x1a8] sm:$0xff]  ;;  %361 = vst.msk [vmem:[%s1012_s23 + $0x198] sm:$0xff] %vm310_vm0, %v198_v51  ;;  %v201_v54 = vld [vmem:[%s1007_s22 + $0x1b0] sm:$0xff] }
  0x31   : > { %362 = vst [vmem:[%s1012_s23 + $0x1a0] sm:$0xff] %v199_v52  ;;  %363 = vst.msk [vmem:[%s1012_s23 + $0x1a8] sm:$0xff] %vm310_vm0, %v200_v53  ;;  %v202_v55 = vld [vmem:[%s1007_s22 + $0x1b8] sm:$0xff]  ;;  %v203_v56 = vld [vmem:[%s1007_s22 + $0x1c0] sm:$0xff] }
  0x32   : > { %364 = vst [vmem:[%s1012_s23 + $0x1b0] sm:$0xff] %v201_v54  ;;  %365 = vst.msk [vmem:[%s1012_s23 + $0x1b8] sm:$0xff] %vm310_vm0, %v202_v55  ;;  %v204_v57 = vld [vmem:[%s1007_s22 + $0x1c8] sm:$0xff]  ;;  %v205_v58 = vld [vmem:[%s1007_s22 + $0x1d0] sm:$0xff] }
  0x33   : > { %366 = vst [vmem:[%s1012_s23 + $0x1c0] sm:$0xff] %v203_v56  ;;  %v206_v59 = vld [vmem:[%s1007_s22 + $0x1d8] sm:$0xff]  ;;  %367 = vst.msk [vmem:[%s1012_s23 + $0x1c8] sm:$0xff] %vm310_vm0, %v204_v57  ;;  %v207_v60 = vld [vmem:[%s1007_s22 + $0x1e0] sm:$0xff] }
  0x34   : > { %368 = vst [vmem:[%s1012_s23 + $0x1d0] sm:$0xff] %v205_v58  ;;  %369 = vst.msk [vmem:[%s1012_s23 + $0x1d8] sm:$0xff] %vm310_vm0, %v206_v59  ;;  %v208_v61 = vld [vmem:[%s1007_s22 + $0x1e8] sm:$0xff]  ;;  %v209_v62 = vld [vmem:[%s1007_s22 + $0x1f0] sm:$0xff] }
  0x35   : > { %370 = vst [vmem:[%s1012_s23 + $0x1e0] sm:$0xff] %v207_v60  ;;  %371 = vst.msk [vmem:[%s1012_s23 + $0x1e8] sm:$0xff] %vm310_vm0, %v208_v61  ;;  %v210_v63 = vld [vmem:[%s1007_s22 + $0x1f8] sm:$0xff]  ;;  %v211_v0 = vld [vmem:[%s1007_s22 + $0x200] sm:$0xff] }
  0x36   : > { %372 = vst [vmem:[%s1012_s23 + $0x1f0] sm:$0xff] %v209_v62  ;;  %v212_v1 = vld [vmem:[%s1007_s22 + $0x208] sm:$0xff]  ;;  %373 = vst.msk [vmem:[%s1012_s23 + $0x1f8] sm:$0xff] %vm310_vm0, %v210_v63  ;;  %v213_v2 = vld [vmem:[%s1007_s22 + $0x210] sm:$0xff] }
  0x37   : > { %374 = vst [vmem:[%s1012_s23 + $0x200] sm:$0xff] %v211_v0  ;;  %375 = vst.msk [vmem:[%s1012_s23 + $0x208] sm:$0xff] %vm310_vm0, %v212_v1  ;;  %v214_v3 = vld [vmem:[%s1007_s22 + $0x218] sm:$0xff]  ;;  %v215_v4 = vld [vmem:[%s1007_s22 + $0x220] sm:$0xff] }
  0x38   : > { %376 = vst [vmem:[%s1012_s23 + $0x210] sm:$0xff] %v213_v2  ;;  %377 = vst.msk [vmem:[%s1012_s23 + $0x218] sm:$0xff] %vm310_vm0, %v214_v3  ;;  %v216_v5 = vld [vmem:[%s1007_s22 + $0x228] sm:$0xff]  ;;  %v217_v6 = vld [vmem:[%s1007_s22 + $0x230] sm:$0xff] }
  0x39   : > { %378 = vst [vmem:[%s1012_s23 + $0x220] sm:$0xff] %v215_v4  ;;  %v218_v7 = vld [vmem:[%s1007_s22 + $0x238] sm:$0xff]  ;;  %379 = vst.msk [vmem:[%s1012_s23 + $0x228] sm:$0xff] %vm310_vm0, %v216_v5  ;;  %v219_v8 = vld [vmem:[%s1007_s22 + $0x240] sm:$0xff] }
  0x3a   : > { %380 = vst [vmem:[%s1012_s23 + $0x230] sm:$0xff] %v217_v6  ;;  %381 = vst.msk [vmem:[%s1012_s23 + $0x238] sm:$0xff] %vm310_vm0, %v218_v7  ;;  %v220_v9 = vld [vmem:[%s1007_s22 + $0x248] sm:$0xff]  ;;  %v221_v10 = vld [vmem:[%s1007_s22 + $0x250] sm:$0xff] }
  0x3b   : > { %382 = vst [vmem:[%s1012_s23 + $0x240] sm:$0xff] %v219_v8  ;;  %383 = vst.msk [vmem:[%s1012_s23 + $0x248] sm:$0xff] %vm310_vm0, %v220_v9  ;;  %v222_v11 = vld [vmem:[%s1007_s22 + $0x258] sm:$0xff]  ;;  %v223_v12 = vld [vmem:[%s1007_s22 + $0x260] sm:$0xff] }
  0x3c   : > { %384 = vst [vmem:[%s1012_s23 + $0x250] sm:$0xff] %v221_v10  ;;  %v224_v13 = vld [vmem:[%s1007_s22 + $0x268] sm:$0xff]  ;;  %385 = vst.msk [vmem:[%s1012_s23 + $0x258] sm:$0xff] %vm310_vm0, %v222_v11  ;;  %v225_v14 = vld [vmem:[%s1007_s22 + $0x270] sm:$0xff] }
  0x3d   : > { %386 = vst [vmem:[%s1012_s23 + $0x260] sm:$0xff] %v223_v12  ;;  %387 = vst.msk [vmem:[%s1012_s23 + $0x268] sm:$0xff] %vm310_vm0, %v224_v13  ;;  %v226_v15 = vld [vmem:[%s1007_s22 + $0x278] sm:$0xff]  ;;  %v227_v16 = vld [vmem:[%s1007_s22 + $0x280] sm:$0xff] }
  0x3e   : > { %388 = vst [vmem:[%s1012_s23 + $0x270] sm:$0xff] %v225_v14  ;;  %389 = vst.msk [vmem:[%s1012_s23 + $0x278] sm:$0xff] %vm310_vm0, %v226_v15  ;;  %v228_v17 = vld [vmem:[%s1007_s22 + $0x288] sm:$0xff]  ;;  %v229_v18 = vld [vmem:[%s1007_s22 + $0x290] sm:$0xff] }
  0x3f   : > { %390 = vst [vmem:[%s1012_s23 + $0x280] sm:$0xff] %v227_v16  ;;  %v230_v19 = vld [vmem:[%s1007_s22 + $0x298] sm:$0xff]  ;;  %391 = vst.msk [vmem:[%s1012_s23 + $0x288] sm:$0xff] %vm310_vm0, %v228_v17  ;;  %v231_v20 = vld [vmem:[%s1007_s22 + $0x2a0] sm:$0xff] }
  0x40   : > { %392 = vst [vmem:[%s1012_s23 + $0x290] sm:$0xff] %v229_v18  ;;  %393 = vst.msk [vmem:[%s1012_s23 + $0x298] sm:$0xff] %vm310_vm0, %v230_v19  ;;  %v232_v21 = vld [vmem:[%s1007_s22 + $0x2a8] sm:$0xff]  ;;  %v233_v22 = vld [vmem:[%s1007_s22 + $0x2b0] sm:$0xff] }
  0x41   : > { %394 = vst [vmem:[%s1012_s23 + $0x2a0] sm:$0xff] %v231_v20  ;;  %395 = vst.msk [vmem:[%s1012_s23 + $0x2a8] sm:$0xff] %vm310_vm0, %v232_v21  ;;  %v234_v23 = vld [vmem:[%s1007_s22 + $0x2b8] sm:$0xff]  ;;  %v235_v24 = vld [vmem:[%s1007_s22 + $0x2c0] sm:$0xff] }
  0x42   : > { %396 = vst [vmem:[%s1012_s23 + $0x2b0] sm:$0xff] %v233_v22  ;;  %v236_v25 = vld [vmem:[%s1007_s22 + $0x2c8] sm:$0xff]  ;;  %397 = vst.msk [vmem:[%s1012_s23 + $0x2b8] sm:$0xff] %vm310_vm0, %v234_v23  ;;  %v237_v26 = vld [vmem:[%s1007_s22 + $0x2d0] sm:$0xff] }
  0x43   : > { %398 = vst [vmem:[%s1012_s23 + $0x2c0] sm:$0xff] %v235_v24  ;;  %399 = vst.msk [vmem:[%s1012_s23 + $0x2c8] sm:$0xff] %vm310_vm0, %v236_v25  ;;  %v238_v27 = vld [vmem:[%s1007_s22 + $0x2d8] sm:$0xff]  ;;  %v239_v28 = vld [vmem:[%s1007_s22 + $0x2e0] sm:$0xff] }
  0x44   : > { %400 = vst [vmem:[%s1012_s23 + $0x2d0] sm:$0xff] %v237_v26  ;;  %401 = vst.msk [vmem:[%s1012_s23 + $0x2d8] sm:$0xff] %vm310_vm0, %v238_v27  ;;  %v240_v29 = vld [vmem:[%s1007_s22 + $0x2e8] sm:$0xff]  ;;  %v241_v30 = vld [vmem:[%s1007_s22 + $0x2f0] sm:$0xff] }
  0x45   : > { %402 = vst [vmem:[%s1012_s23 + $0x2e0] sm:$0xff] %v239_v28  ;;  %v242_v31 = vld [vmem:[%s1007_s22 + $0x2f8] sm:$0xff]  ;;  %403 = vst.msk [vmem:[%s1012_s23 + $0x2e8] sm:$0xff] %vm310_vm0, %v240_v29  ;;  %v243_v32 = vld [vmem:[%s1007_s22 + $0x300] sm:$0xff] }
  0x46   : > { %404 = vst [vmem:[%s1012_s23 + $0x2f0] sm:$0xff] %v241_v30  ;;  %405 = vst.msk [vmem:[%s1012_s23 + $0x2f8] sm:$0xff] %vm310_vm0, %v242_v31  ;;  %v244_v33 = vld [vmem:[%s1007_s22 + $0x308] sm:$0xff]  ;;  %v245_v34 = vld [vmem:[%s1007_s22 + $0x310] sm:$0xff] }
  0x47   : > { %406 = vst [vmem:[%s1012_s23 + $0x300] sm:$0xff] %v243_v32  ;;  %407 = vst.msk [vmem:[%s1012_s23 + $0x308] sm:$0xff] %vm310_vm0, %v244_v33  ;;  %v246_v35 = vld [vmem:[%s1007_s22 + $0x318] sm:$0xff]  ;;  %v247_v36 = vld [vmem:[%s1007_s22 + $0x320] sm:$0xff] }
  0x48   : > { %408 = vst [vmem:[%s1012_s23 + $0x310] sm:$0xff] %v245_v34  ;;  %v248_v37 = vld [vmem:[%s1007_s22 + $0x328] sm:$0xff]  ;;  %409 = vst.msk [vmem:[%s1012_s23 + $0x318] sm:$0xff] %vm310_vm0, %v246_v35  ;;  %v249_v38 = vld [vmem:[%s1007_s22 + $0x330] sm:$0xff] }
  0x49   : > { %410 = vst [vmem:[%s1012_s23 + $0x320] sm:$0xff] %v247_v36  ;;  %411 = vst.msk [vmem:[%s1012_s23 + $0x328] sm:$0xff] %vm310_vm0, %v248_v37  ;;  %v250_v39 = vld [vmem:[%s1007_s22 + $0x338] sm:$0xff]  ;;  %v251_v40 = vld [vmem:[%s1007_s22 + $0x340] sm:$0xff] }
  0x4a   : > { %412 = vst [vmem:[%s1012_s23 + $0x330] sm:$0xff] %v249_v38  ;;  %413 = vst.msk [vmem:[%s1012_s23 + $0x338] sm:$0xff] %vm310_vm0, %v250_v39  ;;  %v252_v41 = vld [vmem:[%s1007_s22 + $0x348] sm:$0xff]  ;;  %v253_v42 = vld [vmem:[%s1007_s22 + $0x350] sm:$0xff] }
  0x4b   : > { %414 = vst [vmem:[%s1012_s23 + $0x340] sm:$0xff] %v251_v40  ;;  %v254_v43 = vld [vmem:[%s1007_s22 + $0x358] sm:$0xff]  ;;  %415 = vst.msk [vmem:[%s1012_s23 + $0x348] sm:$0xff] %vm310_vm0, %v252_v41  ;;  %v255_v44 = vld [vmem:[%s1007_s22 + $0x360] sm:$0xff] }
  0x4c   : > { %416 = vst [vmem:[%s1012_s23 + $0x350] sm:$0xff] %v253_v42  ;;  %417 = vst.msk [vmem:[%s1012_s23 + $0x358] sm:$0xff] %vm310_vm0, %v254_v43  ;;  %v256_v45 = vld [vmem:[%s1007_s22 + $0x368] sm:$0xff]  ;;  %v257_v46 = vld [vmem:[%s1007_s22 + $0x370] sm:$0xff] }
  0x4d   : > { %418 = vst [vmem:[%s1012_s23 + $0x360] sm:$0xff] %v255_v44  ;;  %419 = vst.msk [vmem:[%s1012_s23 + $0x368] sm:$0xff] %vm310_vm0, %v256_v45  ;;  %v258_v47 = vld [vmem:[%s1007_s22 + $0x378] sm:$0xff]  ;;  %v259_v48 = vld [vmem:[%s1007_s22 + $0x380] sm:$0xff] }
  0x4e   : > { %420 = vst [vmem:[%s1012_s23 + $0x370] sm:$0xff] %v257_v46  ;;  %v260_v49 = vld [vmem:[%s1007_s22 + $0x388] sm:$0xff]  ;;  %421 = vst.msk [vmem:[%s1012_s23 + $0x378] sm:$0xff] %vm310_vm0, %v258_v47  ;;  %v261_v50 = vld [vmem:[%s1007_s22 + $0x390] sm:$0xff] }
  0x4f   : > { %422 = vst [vmem:[%s1012_s23 + $0x380] sm:$0xff] %v259_v48  ;;  %423 = vst.msk [vmem:[%s1012_s23 + $0x388] sm:$0xff] %vm310_vm0, %v260_v49  ;;  %v262_v51 = vld [vmem:[%s1007_s22 + $0x398] sm:$0xff]  ;;  %v263_v52 = vld [vmem:[%s1007_s22 + $0x3a0] sm:$0xff] }
  0x50   : > { %424 = vst [vmem:[%s1012_s23 + $0x390] sm:$0xff] %v261_v50  ;;  %425 = vst.msk [vmem:[%s1012_s23 + $0x398] sm:$0xff] %vm310_vm0, %v262_v51  ;;  %v264_v53 = vld [vmem:[%s1007_s22 + $0x3a8] sm:$0xff]  ;;  %v265_v54 = vld [vmem:[%s1007_s22 + $0x3b0] sm:$0xff] }
  0x51   : > { %426 = vst [vmem:[%s1012_s23 + $0x3a0] sm:$0xff] %v263_v52  ;;  %v266_v55 = vld [vmem:[%s1007_s22 + $0x3b8] sm:$0xff]  ;;  %427 = vst.msk [vmem:[%s1012_s23 + $0x3a8] sm:$0xff] %vm310_vm0, %v264_v53  ;;  %v267_v56 = vld [vmem:[%s1007_s22 + $0x3c0] sm:$0xff] }
  0x52   : > { %428 = vst [vmem:[%s1012_s23 + $0x3b0] sm:$0xff] %v265_v54  ;;  %429 = vst.msk [vmem:[%s1012_s23 + $0x3b8] sm:$0xff] %vm310_vm0, %v266_v55  ;;  %v268_v57 = vld [vmem:[%s1007_s22 + $0x3c8] sm:$0xff]  ;;  %v269_v58 = vld [vmem:[%s1007_s22 + $0x3d0] sm:$0xff] }
  0x53   : > { %430 = vst [vmem:[%s1012_s23 + $0x3c0] sm:$0xff] %v267_v56  ;;  %431 = vst.msk [vmem:[%s1012_s23 + $0x3c8] sm:$0xff] %vm310_vm0, %v268_v57  ;;  %v270_v59 = vld [vmem:[%s1007_s22 + $0x3d8] sm:$0xff]  ;;  %v271_v60 = vld [vmem:[%s1007_s22 + $0x3e0] sm:$0xff] }
  0x54   : > { %432 = vst [vmem:[%s1012_s23 + $0x3d0] sm:$0xff] %v269_v58  ;;  %v272_v61 = vld [vmem:[%s1007_s22 + $0x3e8] sm:$0xff]  ;;  %433 = vst.msk [vmem:[%s1012_s23 + $0x3d8] sm:$0xff] %vm310_vm0, %v270_v59  ;;  %v273_v62 = vld [vmem:[%s1007_s22 + $0x3f0] sm:$0xff] }
  0x55   : > { %434 = vst [vmem:[%s1012_s23 + $0x3e0] sm:$0xff] %v271_v60  ;;  %435 = vst.msk [vmem:[%s1012_s23 + $0x3e8] sm:$0xff] %vm310_vm0, %v272_v61  ;;  %v274_v63 = vld [vmem:[%s1007_s22 + $0x3f8] sm:$0xff]  ;;  %v275_v0 = vld [vmem:[%s1007_s22 + $0x400] sm:$0xff] }
  0x56   : > { %436 = vst [vmem:[%s1012_s23 + $0x3f0] sm:$0xff] %v273_v62  ;;  %437 = vst.msk [vmem:[%s1012_s23 + $0x3f8] sm:$0xff] %vm310_vm0, %v274_v63  ;;  %v276_v1 = vld [vmem:[%s1007_s22 + $0x408] sm:$0xff]  ;;  %v277_v2 = vld [vmem:[%s1007_s22 + $0x410] sm:$0xff] }
  0x57   : > { %438 = vst [vmem:[%s1012_s23 + $0x400] sm:$0xff] %v275_v0  ;;  %v278_v3 = vld [vmem:[%s1007_s22 + $0x418] sm:$0xff]  ;;  %439 = vst.msk [vmem:[%s1012_s23 + $0x408] sm:$0xff] %vm310_vm0, %v276_v1  ;;  %v279_v4 = vld [vmem:[%s1007_s22 + $0x420] sm:$0xff] }
  0x58   : > { %440 = vst [vmem:[%s1012_s23 + $0x410] sm:$0xff] %v277_v2  ;;  %441 = vst.msk [vmem:[%s1012_s23 + $0x418] sm:$0xff] %vm310_vm0, %v278_v3  ;;  %v280_v5 = vld [vmem:[%s1007_s22 + $0x428] sm:$0xff]  ;;  %v281_v6 = vld [vmem:[%s1007_s22 + $0x430] sm:$0xff] }
  0x59   : > { %442 = vst [vmem:[%s1012_s23 + $0x420] sm:$0xff] %v279_v4  ;;  %443 = vst.msk [vmem:[%s1012_s23 + $0x428] sm:$0xff] %vm310_vm0, %v280_v5  ;;  %v282_v7 = vld [vmem:[%s1007_s22 + $0x438] sm:$0xff]  ;;  %v283_v8 = vld [vmem:[%s1007_s22 + $0x440] sm:$0xff] }
  0x5a   : > { %444 = vst [vmem:[%s1012_s23 + $0x430] sm:$0xff] %v281_v6  ;;  %v284_v9 = vld [vmem:[%s1007_s22 + $0x448] sm:$0xff]  ;;  %445 = vst.msk [vmem:[%s1012_s23 + $0x438] sm:$0xff] %vm310_vm0, %v282_v7  ;;  %v285_v10 = vld [vmem:[%s1007_s22 + $0x450] sm:$0xff] }
  0x5b   : > { %446 = vst [vmem:[%s1012_s23 + $0x440] sm:$0xff] %v283_v8  ;;  %447 = vst.msk [vmem:[%s1012_s23 + $0x448] sm:$0xff] %vm310_vm0, %v284_v9  ;;  %v286_v11 = vld [vmem:[%s1007_s22 + $0x458] sm:$0xff]  ;;  %v287_v12 = vld [vmem:[%s1007_s22 + $0x460] sm:$0xff] }
  0x5c   : > { %448 = vst [vmem:[%s1012_s23 + $0x450] sm:$0xff] %v285_v10  ;;  %449 = vst.msk [vmem:[%s1012_s23 + $0x458] sm:$0xff] %vm310_vm0, %v286_v11  ;;  %v288_v13 = vld [vmem:[%s1007_s22 + $0x468] sm:$0xff]  ;;  %v289_v14 = vld [vmem:[%s1007_s22 + $0x470] sm:$0xff] }
  0x5d   : > { %450 = vst [vmem:[%s1012_s23 + $0x460] sm:$0xff] %v287_v12  ;;  %v290_v15 = vld [vmem:[%s1007_s22 + $0x478] sm:$0xff]  ;;  %451 = vst.msk [vmem:[%s1012_s23 + $0x468] sm:$0xff] %vm310_vm0, %v288_v13  ;;  %v291_v16 = vld [vmem:[%s1007_s22 + $0x480] sm:$0xff] }
  0x5e   : > { %452 = vst [vmem:[%s1012_s23 + $0x470] sm:$0xff] %v289_v14  ;;  %453 = vst.msk [vmem:[%s1012_s23 + $0x478] sm:$0xff] %vm310_vm0, %v290_v15  ;;  %v292_v17 = vld [vmem:[%s1007_s22 + $0x488] sm:$0xff]  ;;  %v293_v18 = vld [vmem:[%s1007_s22 + $0x490] sm:$0xff] }
  0x5f   : > { %454 = vst [vmem:[%s1012_s23 + $0x480] sm:$0xff] %v291_v16  ;;  %455 = vst.msk [vmem:[%s1012_s23 + $0x488] sm:$0xff] %vm310_vm0, %v292_v17  ;;  %v294_v19 = vld [vmem:[%s1007_s22 + $0x498] sm:$0xff]  ;;  %v295_v20 = vld [vmem:[%s1007_s22 + $0x4a0] sm:$0xff] }
  0x60   : > { %456 = vst [vmem:[%s1012_s23 + $0x490] sm:$0xff] %v293_v18  ;;  %v296_v21 = vld [vmem:[%s1007_s22 + $0x4a8] sm:$0xff]  ;;  %457 = vst.msk [vmem:[%s1012_s23 + $0x498] sm:$0xff] %vm310_vm0, %v294_v19  ;;  %v297_v22 = vld [vmem:[%s1007_s22 + $0x4b0] sm:$0xff] }
  0x61   : > { %458 = vst [vmem:[%s1012_s23 + $0x4a0] sm:$0xff] %v295_v20  ;;  %459 = vst.msk [vmem:[%s1012_s23 + $0x4a8] sm:$0xff] %vm310_vm0, %v296_v21  ;;  %v298_v23 = vld [vmem:[%s1007_s22 + $0x4b8] sm:$0xff]  ;;  %v299_v24 = vld [vmem:[%s1007_s22 + $0x4c0] sm:$0xff]  ;;  %478 = sbr.rel (!%p995_p4) target bundleno = 176 (0xb0), region = 28 }
  0x62   : > { %460 = vst [vmem:[%s1012_s23 + $0x4b0] sm:$0xff] %v297_v22  ;;  %461 = vst.msk [vmem:[%s1012_s23 + $0x4b8] sm:$0xff] %vm310_vm0, %v298_v23  ;;  %v300_v25 = vld [vmem:[%s1007_s22 + $0x4c8] sm:$0xff]  ;;  %v301_v26 = vld [vmem:[%s1007_s22 + $0x4d0] sm:$0xff] }
  0x63   : > { %462 = vst [vmem:[%s1012_s23 + $0x4c0] sm:$0xff] %v299_v24  ;;  %v302_v27 = vld [vmem:[%s1007_s22 + $0x4d8] sm:$0xff]  ;;  %463 = vst.msk [vmem:[%s1012_s23 + $0x4c8] sm:$0xff] %vm310_vm0, %v300_v25  ;;  %v303_v28 = vld [vmem:[%s1007_s22 + $0x4e0] sm:$0xff] }
  0x64   : > { %464 = vst [vmem:[%s1012_s23 + $0x4d0] sm:$0xff] %v301_v26  ;;  %465 = vst.msk [vmem:[%s1012_s23 + $0x4d8] sm:$0xff] %vm310_vm0, %v302_v27  ;;  %v304_v29 = vld [vmem:[%s1007_s22 + $0x4e8] sm:$0xff]  ;;  %v305_v30 = vld [vmem:[%s1007_s22 + $0x4f0] sm:$0xff] }
  0x65   : > { %466 = vst [vmem:[%s1012_s23 + $0x4e0] sm:$0xff] %v303_v28  ;;  %467 = vst.msk [vmem:[%s1012_s23 + $0x4e8] sm:$0xff] %vm310_vm0, %v304_v29  ;;  %v306_v31 = vld [vmem:[%s1007_s22 + $0x4f8] sm:$0xff]  ;;  %v307_v32 = vld [vmem:[%s1007_s22 + $0x500] sm:$0xff] }
  0x66   : > { %468 = vst [vmem:[%s1012_s23 + $0x4f0] sm:$0xff] %v305_v30  ;;  %v308_v33 = vld [vmem:[%s1007_s22 + $0x508] sm:$0xff]  ;;  %469 = vst.msk [vmem:[%s1012_s23 + $0x4f8] sm:$0xff] %vm310_vm0, %v306_v31 }
  0x67   : > { %470 = vst [vmem:[%s1012_s23 + $0x500] sm:$0xff] %v307_v32  ;;  %471 = vst.msk [vmem:[%s1012_s23 + $0x508] sm:$0xff] %vm310_vm0, %v308_v33 }
  0x68   : > { %s1638_s24 = smov (!%p481_p8, %s480_s24), 81 }
  0x69   : > { %s780_s29 = sshll.u32 %s1638_s24, 8 }
  0x6a   : > { %p767_p9 = scmp.eq.s32.totalorder %s780_s29, 0 }
  0x6b   : > { %s1429_s30 = sshrl.u32 (!%p767_p9), %s1638_s24, 5 }
  0x6c   : > { %491 = sbr.rel (%p767_p9) target bundleno = 176 (0xb0), region = 32  ;;  %p768_p10 = scmp.le.s32.totalorder (!%p767_p9), %s1429_s30, 0 }
  0x73   : > { %712 = sbr.rel (%p768_p10) target bundleno = 155 (0x9b), region = 80  ;;  %s1629_s2 = smov (!%p768_p10), %s1423_s28 }
  0x74   : > { %s1630_s3 = smov (!%p768_p10), %s1012_s23  ;;  %s1438_s4 = smov (!%p768_p10), 0  }
  0x75   : > { %s1440_s5 = smov (!%p768_p10), 0  }
  0x7a LB: >> { %v504_v34 = vld [vmem:[%s937_s3] sm:$0xff]  ;;  %v506_v35 = vld [vmem:[%s937_s3 + $0x10] sm:$0xff]  ;;  %s632_s6 = sadd.s32 1, %s941_s4  ;;  %v568_v2 = vld [vmem:[%s937_s3 + $0x8] sm:$0xff]  ;;  %s498_s5 = sadd.s32 1, %s945_s5   ;;  %s945_s5 = sphi %s1440_s5, %s498_s5   ;;  %s941_s4 = sphi %s1438_s4, %s1633_s4   ;;  %s937_s3 = sphi %s1630_s3, %s1632_s3   ;;  %s933_s2 = sphi %s1629_s2, %s1631_s2  }
  0x7b   : >> { %v508_v36 = vld [vmem:[%s937_s3 + $0x20] sm:$0xff]  ;;  %505 = vst [vmem:[%s933_s2] sm:$0xff] %v504_v34  ;;  %507 = vst [vmem:[%s933_s2 + $0x10] sm:$0xff] %v506_v35  ;;  %v510_v37 = vld [vmem:[%s937_s3 + $0x30] sm:$0xff]  ;;  %p633_p11 = scmp.ge.s32.totalorder %s632_s6, %s1429_s30  ;;  %p497_p12 = scmp.ge.s32.totalorder %s498_s5, %s1429_s30 }
  0x7c   : >> { %509 = vst [vmem:[%s933_s2 + $0x20] sm:$0xff] %v508_v36  ;;  %v512_v38 = vld [vmem:[%s937_s3 + $0x40] sm:$0xff]  ;;  %v514_v39 = vld [vmem:[%s937_s3 + $0x50] sm:$0xff]  ;;  %511 = vst [vmem:[%s933_s2 + $0x30] sm:$0xff] %v510_v37 }
  0x7d   : >> { %513 = vst [vmem:[%s933_s2 + $0x40] sm:$0xff] %v512_v38  ;;  %515 = vst [vmem:[%s933_s2 + $0x50] sm:$0xff] %v514_v39  ;;  %v516_v40 = vld [vmem:[%s937_s3 + $0x60] sm:$0xff]  ;;  %v518_v41 = vld [vmem:[%s937_s3 + $0x70] sm:$0xff]  ;;  %s1640_s6 = smov (%p633_p11, %s632_s6), 0 }
  0x7e   : >> { %v520_v42 = vld [vmem:[%s937_s3 + $0x80] sm:$0xff]  ;;  %517 = vst [vmem:[%s933_s2 + $0x60] sm:$0xff] %v516_v40  ;;  %519 = vst [vmem:[%s933_s2 + $0x70] sm:$0xff] %v518_v41  ;;  %v522_v43 = vld [vmem:[%s937_s3 + $0x90] sm:$0xff]  ;;  %s769_s8 = sshll.u32 %s1640_s6, 9  ;;  %s1633_s4 = smov %s1640_s6 }
  0x7f   : >> { %521 = vst [vmem:[%s933_s2 + $0x80] sm:$0xff] %v520_v42  ;;  %v524_v44 = vld [vmem:[%s937_s3 + $0xa0] sm:$0xff]  ;;  %v526_v45 = vld [vmem:[%s937_s3 + $0xb0] sm:$0xff]  ;;  %523 = vst [vmem:[%s933_s2 + $0x90] sm:$0xff] %v522_v43  ;;  %s1496_s9 = scalar_lea.vmem %s1012_s23, %s769_s8 [#allocation2]   ;;  %s1499_s11 = scalar_lea.vmem %s1423_s28, %s769_s8  }
  0x80   : >> { %525 = vst [vmem:[%s933_s2 + $0xa0] sm:$0xff] %v524_v44  ;;  %527 = vst [vmem:[%s933_s2 + $0xb0] sm:$0xff] %v526_v45  ;;  %v528_v46 = vld [vmem:[%s937_s3 + $0xc0] sm:$0xff]  ;;  %v530_v47 = vld [vmem:[%s937_s3 + $0xd0] sm:$0xff] }
  0x81   : >> { %v532_v48 = vld [vmem:[%s937_s3 + $0xe0] sm:$0xff]  ;;  %529 = vst [vmem:[%s933_s2 + $0xc0] sm:$0xff] %v528_v46  ;;  %531 = vst [vmem:[%s933_s2 + $0xd0] sm:$0xff] %v530_v47  ;;  %v534_v49 = vld [vmem:[%s937_s3 + $0xf0] sm:$0xff] }
  0x82   : >> { %533 = vst [vmem:[%s933_s2 + $0xe0] sm:$0xff] %v532_v48  ;;  %v536_v50 = vld [vmem:[%s937_s3 + $0x100] sm:$0xff]  ;;  %v538_v51 = vld [vmem:[%s937_s3 + $0x110] sm:$0xff]  ;;  %535 = vst [vmem:[%s933_s2 + $0xf0] sm:$0xff] %v534_v49 }
  0x83   : >> { %537 = vst [vmem:[%s933_s2 + $0x100] sm:$0xff] %v536_v50  ;;  %539 = vst [vmem:[%s933_s2 + $0x110] sm:$0xff] %v538_v51  ;;  %v540_v52 = vld [vmem:[%s937_s3 + $0x120] sm:$0xff]  ;;  %v542_v53 = vld [vmem:[%s937_s3 + $0x130] sm:$0xff] }
  0x84   : >> { %v544_v54 = vld [vmem:[%s937_s3 + $0x140] sm:$0xff]  ;;  %541 = vst [vmem:[%s933_s2 + $0x120] sm:$0xff] %v540_v52  ;;  %543 = vst [vmem:[%s933_s2 + $0x130] sm:$0xff] %v542_v53  ;;  %v546_v55 = vld [vmem:[%s937_s3 + $0x150] sm:$0xff] }
  0x85   : >> { %545 = vst [vmem:[%s933_s2 + $0x140] sm:$0xff] %v544_v54  ;;  %v548_v56 = vld [vmem:[%s937_s3 + $0x160] sm:$0xff]  ;;  %v550_v57 = vld [vmem:[%s937_s3 + $0x170] sm:$0xff]  ;;  %547 = vst [vmem:[%s933_s2 + $0x150] sm:$0xff] %v546_v55 }
  0x86   : >> { %549 = vst [vmem:[%s933_s2 + $0x160] sm:$0xff] %v548_v56  ;;  %551 = vst [vmem:[%s933_s2 + $0x170] sm:$0xff] %v550_v57  ;;  %v552_v58 = vld [vmem:[%s937_s3 + $0x180] sm:$0xff]  ;;  %v554_v59 = vld [vmem:[%s937_s3 + $0x190] sm:$0xff] }
  0x87   : >> { %v556_v60 = vld [vmem:[%s937_s3 + $0x1a0] sm:$0xff]  ;;  %553 = vst [vmem:[%s933_s2 + $0x180] sm:$0xff] %v552_v58  ;;  %555 = vst [vmem:[%s933_s2 + $0x190] sm:$0xff] %v554_v59  ;;  %v558_v61 = vld [vmem:[%s937_s3 + $0x1b0] sm:$0xff] }
  0x88   : >> { %557 = vst [vmem:[%s933_s2 + $0x1a0] sm:$0xff] %v556_v60  ;;  %v560_v62 = vld [vmem:[%s937_s3 + $0x1c0] sm:$0xff]  ;;  %v562_v63 = vld [vmem:[%s937_s3 + $0x1d0] sm:$0xff]  ;;  %559 = vst [vmem:[%s933_s2 + $0x1b0] sm:$0xff] %v558_v61 }
  0x89   : >> { %561 = vst [vmem:[%s933_s2 + $0x1c0] sm:$0xff] %v560_v62  ;;  %563 = vst [vmem:[%s933_s2 + $0x1d0] sm:$0xff] %v562_v63  ;;  %v564_v0 = vld [vmem:[%s937_s3 + $0x1e0] sm:$0xff]  ;;  %v566_v1 = vld [vmem:[%s937_s3 + $0x1f0] sm:$0xff] }
  0x8a   : >> { %565 = vst [vmem:[%s933_s2 + $0x1e0] sm:$0xff] %v564_v0  ;;  %567 = vst [vmem:[%s933_s2 + $0x1f0] sm:$0xff] %v566_v1  ;;  %v570_v3 = vld [vmem:[%s937_s3 + $0x18] sm:$0xff]  ;;  %v572_v4 = vld [vmem:[%s937_s3 + $0x28] sm:$0xff] }
  0x8b   : >> { %569 = vst [vmem:[%s933_s2 + $0x8] sm:$0xff] %v568_v2  ;;  %v574_v5 = vld [vmem:[%s937_s3 + $0x38] sm:$0xff]  ;;  %571 = vst [vmem:[%s933_s2 + $0x18] sm:$0xff] %v570_v3  ;;  %v576_v6 = vld [vmem:[%s937_s3 + $0x48] sm:$0xff] }
  0x8c   : >> { %573 = vst [vmem:[%s933_s2 + $0x28] sm:$0xff] %v572_v4  ;;  %575 = vst [vmem:[%s933_s2 + $0x38] sm:$0xff] %v574_v5  ;;  %v578_v7 = vld [vmem:[%s937_s3 + $0x58] sm:$0xff]  ;;  %v580_v8 = vld [vmem:[%s937_s3 + $0x68] sm:$0xff] }
  0x8d   : >> { %577 = vst [vmem:[%s933_s2 + $0x48] sm:$0xff] %v576_v6  ;;  %579 = vst [vmem:[%s933_s2 + $0x58] sm:$0xff] %v578_v7  ;;  %v582_v9 = vld [vmem:[%s937_s3 + $0x78] sm:$0xff]  ;;  %v584_v10 = vld [vmem:[%s937_s3 + $0x88] sm:$0xff] }
  0x8e   : >> { %581 = vst [vmem:[%s933_s2 + $0x68] sm:$0xff] %v580_v8  ;;  %v586_v11 = vld [vmem:[%s937_s3 + $0x98] sm:$0xff]  ;;  %583 = vst [vmem:[%s933_s2 + $0x78] sm:$0xff] %v582_v9  ;;  %v588_v12 = vld [vmem:[%s937_s3 + $0xa8] sm:$0xff] }
  0x8f   : >> { %585 = vst [vmem:[%s933_s2 + $0x88] sm:$0xff] %v584_v10  ;;  %587 = vst [vmem:[%s933_s2 + $0x98] sm:$0xff] %v586_v11  ;;  %v590_v13 = vld [vmem:[%s937_s3 + $0xb8] sm:$0xff]  ;;  %v592_v14 = vld [vmem:[%s937_s3 + $0xc8] sm:$0xff] }
  0x90   : >> { %589 = vst [vmem:[%s933_s2 + $0xa8] sm:$0xff] %v588_v12  ;;  %591 = vst [vmem:[%s933_s2 + $0xb8] sm:$0xff] %v590_v13  ;;  %v594_v15 = vld [vmem:[%s937_s3 + $0xd8] sm:$0xff]  ;;  %v596_v16 = vld [vmem:[%s937_s3 + $0xe8] sm:$0xff] }
  0x91   : >> { %593 = vst [vmem:[%s933_s2 + $0xc8] sm:$0xff] %v592_v14  ;;  %v598_v17 = vld [vmem:[%s937_s3 + $0xf8] sm:$0xff]  ;;  %595 = vst [vmem:[%s933_s2 + $0xd8] sm:$0xff] %v594_v15  ;;  %v600_v18 = vld [vmem:[%s937_s3 + $0x108] sm:$0xff] }
  0x92   : >> { %597 = vst [vmem:[%s933_s2 + $0xe8] sm:$0xff] %v596_v16  ;;  %599 = vst [vmem:[%s933_s2 + $0xf8] sm:$0xff] %v598_v17  ;;  %v602_v19 = vld [vmem:[%s937_s3 + $0x118] sm:$0xff]  ;;  %v604_v20 = vld [vmem:[%s937_s3 + $0x128] sm:$0xff] }
  0x93   : >> { %601 = vst [vmem:[%s933_s2 + $0x108] sm:$0xff] %v600_v18  ;;  %603 = vst [vmem:[%s933_s2 + $0x118] sm:$0xff] %v602_v19  ;;  %v606_v21 = vld [vmem:[%s937_s3 + $0x138] sm:$0xff]  ;;  %v608_v22 = vld [vmem:[%s937_s3 + $0x148] sm:$0xff] }
  0x94   : >> { %605 = vst [vmem:[%s933_s2 + $0x128] sm:$0xff] %v604_v20  ;;  %v610_v23 = vld [vmem:[%s937_s3 + $0x158] sm:$0xff]  ;;  %607 = vst [vmem:[%s933_s2 + $0x138] sm:$0xff] %v606_v21  ;;  %v612_v24 = vld [vmem:[%s937_s3 + $0x168] sm:$0xff]  ;;  %500 = sbr.rel (!%p497_p12) target bundleno = 122 (0x7a), region = 86 }
  0x95   : >> { %609 = vst [vmem:[%s933_s2 + $0x148] sm:$0xff] %v608_v22  ;;  %611 = vst [vmem:[%s933_s2 + $0x158] sm:$0xff] %v610_v23  ;;  %v614_v25 = vld [vmem:[%s937_s3 + $0x178] sm:$0xff]  ;;  %v616_v26 = vld [vmem:[%s937_s3 + $0x188] sm:$0xff] }
  0x96   : >> { %613 = vst [vmem:[%s933_s2 + $0x168] sm:$0xff] %v612_v24  ;;  %615 = vst [vmem:[%s933_s2 + $0x178] sm:$0xff] %v614_v25  ;;  %v618_v27 = vld [vmem:[%s937_s3 + $0x198] sm:$0xff]  ;;  %v620_v28 = vld [vmem:[%s937_s3 + $0x1a8] sm:$0xff] }
  0x97   : >> { %617 = vst [vmem:[%s933_s2 + $0x188] sm:$0xff] %v616_v26  ;;  %v622_v29 = vld [vmem:[%s937_s3 + $0x1b8] sm:$0xff]  ;;  %619 = vst [vmem:[%s933_s2 + $0x198] sm:$0xff] %v618_v27  ;;  %v624_v30 = vld [vmem:[%s937_s3 + $0x1c8] sm:$0xff] }
  0x98   : >> { %621 = vst [vmem:[%s933_s2 + $0x1a8] sm:$0xff] %v620_v28  ;;  %623 = vst [vmem:[%s933_s2 + $0x1b8] sm:$0xff] %v622_v29  ;;  %v626_v31 = vld [vmem:[%s937_s3 + $0x1d8] sm:$0xff]  ;;  %v628_v32 = vld [vmem:[%s937_s3 + $0x1e8] sm:$0xff] }
  0x99   : >> { %625 = vst [vmem:[%s933_s2 + $0x1c8] sm:$0xff] %v624_v30  ;;  %627 = vst [vmem:[%s933_s2 + $0x1d8] sm:$0xff] %v626_v31  ;;  %v630_v33 = vld [vmem:[%s937_s3 + $0x1f8] sm:$0xff]  ;;  %s1632_s3 = smov %s1496_s9 }
  0x9a   : >> { %629 = vst [vmem:[%s933_s2 + $0x1e8] sm:$0xff] %v628_v32  ;;  %631 = vst [vmem:[%s933_s2 + $0x1f8] sm:$0xff] %v630_v33  ;;  %s1631_s2 = smov %s1499_s11 }
  0x9b PF: > { %s1604_s12 = sand.u32 31, %s1638_s24   ;;  %s783_s14 = sshll.u32 %s1429_s30, 9 }
  0x9c   : > { %s1608_s15 = scalar_lea.vmem %s1012_s23, %s783_s14 [#allocation2]   ;;  %s645_s16 = scalar_lea.vmem %s1423_s28, %s783_s14  }
  0x9d   : > { %p774_p13 = scmp.le.s32.totalorder %s1604_s12, 0 }
  0x9e   : > { %s947_s17 = smov (!%p774_p13), %s645_s16   ;;  %s951_s18 = smov (!%p774_p13), %s1608_s15  }
  0x9f   : > { %726 = sbr.rel (%p774_p13) target bundleno = 176 (0xb0), region = 91  ;;  %s955_s19 = smov (!%p774_p13), 0  }
  0xa0   : > { %s959_s20 = smov (!%p774_p13), 0  }
  0xa6 LB: >> { %v655_v34 = vld [vmem:[%s953_s18] sm:$0xff]  ;;  %v657_v35 = vld [vmem:[%s953_s18 + $0x8] sm:$0xff]  ;;  %s659_s21 = sadd.s32 1, %s957_s19  ;;  %s649_s20 = sadd.s32 1, %s961_s20   ;;  %s961_s20 = sphi %s959_s20, %s649_s20   ;;  %s957_s19 = sphi %s955_s19, %s956_s19   ;;  %s953_s18 = sphi %s951_s18, %s664_s18   ;;  %s949_s17 = sphi %s947_s17, %s665_s17  }
  0xa7   : >> { %656 = vst [vmem:[%s949_s17] sm:$0xff] %v655_v34  ;;  %658 = vst [vmem:[%s949_s17 + $0x8] sm:$0xff] %v657_v35  ;;  %p660_p0 = scmp.ge.s32.totalorder %s659_s21, %s1604_s12  ;;  %p648_p1 = scmp.ge.s32.totalorder %s649_s20, %s1604_s12 }
  0xa9   : >> { %s1642_s21 = smov (%p660_p0, %s659_s21), 0  ;;  %651 = sbr.rel (!%p648_p1) target bundleno = 166 (0xa6), region = 97 }
  0xaa   : >> { %s775_s22 = sshll.u32 %s1642_s21, 4  ;;  %s956_s19 = smov %s1642_s21  }
  0xab   : >> { %s664_s18 = scalar_lea.vmem %s1608_s15, %s775_s22 [#allocation2]   ;;  %s665_s17 = scalar_lea.vmem %s645_s16, %s775_s22  }
  0xb0 PF: > { %p8_p2 = scmp.ge.s32.totalorder %s986_s10, 6   ;;  %s1634_s6 = smov %s925_s7 }
  0xb1   : > { %s1635_s7 = smov %s993_s13  ;;  %s1636_s8 = smov %s986_s10 }
  0xb2   :  { %10 = sbr.rel (!%p8_p2) target bundleno = 2 (0x2), region = 108 }

</bundles_post_ra>
